<compile_context>
chip_gen: v7x
topology: tpu7x:2x2x1
jax: 0.10.0
libtpu: 0.0.40
codegen_flags: <defaults>
</compile_context>

<pallas_src>
import functools

import jax
import jax.numpy as jnp
from jax.experimental import pallas as pl
from jax.experimental.pallas import tpu as pltpu


def _sdpa_kernel(scale, q_ref, k_ref, v_ref, mask_ref, ctx_ref, *prob_refs):
    # One batch element per grid step; all H heads processed together.
    q = q_ref[0]                                  # (H, S, D) f32
    k = k_ref[0]                                  # (H, S, D) f32
    v = v_ref[0]                                  # (H, S, D) f32
    mask = mask_ref[0].astype(jnp.float32)        # (S, S), nonzero == masked

    # scores = Q @ K^T * scale, batched over heads (MXU, f32 accumulation).
    scores = jnp.einsum("hqd,hkd->hqk", q, k,
                        preferred_element_type=jnp.float32) * scale

    # masked_fill(attn_mask, -1e9): mask is shared across heads.
    masked = jnp.broadcast_to(mask[None, :, :], scores.shape) != 0.0
    scores = jnp.where(masked, jnp.float32(-1e9), scores)

    # Numerically stable softmax over keys; divide goes to the EUP slot.
    m = jnp.max(scores, axis=-1, keepdims=True)
    e = jnp.exp(scores - m)
    denom = jnp.sum(e, axis=-1, keepdims=True)
    prob = e * pl.reciprocal(denom, approx=True)

    # TODO(synk): nn.Dropout(hidden_dropout_prob) on attn_prob is identity here
    # (eval mode).

    ctx = jnp.einsum("hqk,hkd->hqd", prob, v,
                     preferred_element_type=jnp.float32)

    ctx_ref[0] = ctx
    if prob_refs:                                 # optional attn_prob writeback
        prob_refs[0][0] = prob


def scaled_dot_product_attention(Q, K, V, attn_mask, *, scale=None,
                                 return_attn_prob=True):
    """Q/K/V: (B, H, S, D) f32; attn_mask: (B, S, S), True/nonzero == masked."""
    B, H, S, D = Q.shape
    if scale is None:
        scale = 1.0 / (D ** 0.5)
    mask_i8 = attn_mask.astype(jnp.int8)          # keep mask narrow end-to-end

    qkv_spec = pl.BlockSpec((1, H, S, D), lambda b: (b, 0, 0, 0))
    mask_spec = pl.BlockSpec((1, S, S), lambda b: (b, 0, 0))
    ctx_spec = pl.BlockSpec((1, H, S, D), lambda b: (b, 0, 0, 0))

    out_shape = [jax.ShapeDtypeStruct((B, H, S, D), jnp.float32)]
    out_specs = [ctx_spec]
    if return_attn_prob:
        out_shape.append(jax.ShapeDtypeStruct((B, H, S, S), jnp.float32))
        out_specs.append(pl.BlockSpec((1, H, S, S), lambda b: (b, 0, 0, 0)))

    kernel = functools.partial(_sdpa_kernel, float(scale))
    outs = pl.pallas_call(
        kernel,
        out_shape=tuple(out_shape),
        grid=(B,),
        in_specs=[qkv_spec, qkv_spec, qkv_spec, mask_spec],
        out_specs=tuple(out_specs),
        compiler_params=pltpu.CompilerParams(
            dimension_semantics=("parallel",)),
    )(Q, K, V, mask_i8)

    if return_attn_prob:
        context, attn_prob = outs
        return context, attn_prob
    (context,) = outs
    return context


def _reference(Q, K, V, attn_mask, scale):
    scores = jnp.einsum("bhqd,bhkd->bhqk", Q, K) * scale
    scores = jnp.where(attn_mask[:, None, :, :], jnp.float32(-1e9), scores)
    prob = jax.nn.softmax(scores, axis=-1)
    ctx = jnp.einsum("bhqk,bhkd->bhqd", prob, V)
    return ctx, prob


class Config:
    hidden_size = 32
    num_attention_heads = 4       # head_size = 8
    hidden_dropout_prob = 0.1     # identity in eval mode


if __name__ == "__main__":
    config = Config()
    head_size = config.hidden_size // config.num_attention_heads
    scale = 1.0 / (head_size ** 0.5)

    B, H, S, D = 2, config.num_attention_heads, 8, head_size
    key = jax.random.PRNGKey(0)
    kq, kk, kv = jax.random.split(key, 3)
    Q = jax.random.normal(kq, (B, H, S, D), jnp.float32)
    K = jax.random.normal(kk, (B, H, S, D), jnp.float32)
    V = jax.random.normal(kv, (B, H, S, D), jnp.float32)

    # Padding-style mask: mask out the last two key positions of batch 1.
    attn_mask = jnp.zeros((B, S, S), dtype=bool)
    attn_mask = attn_mask.at[1, :, S - 2:].set(True)

    context, attn_prob = scaled_dot_product_attention(
        Q, K, V, attn_mask, scale=scale, return_attn_prob=True)
    jax.block_until_ready((context, attn_prob))

    # Variant without attn_prob materialization (half the output HBM traffic).
    context_only = scaled_dot_product_attention(
        Q, K, V, attn_mask, scale=scale, return_attn_prob=False)
    jax.block_until_ready(context_only)

    assert context.shape == (B, H, S, D)
    assert attn_prob.shape == (B, H, S, S)

    ref_ctx, ref_prob = _reference(Q, K, V, attn_mask, scale)
    # Loose tolerance: pl.reciprocal(approx=True) has ~2^-12 relative error.
    assert jnp.allclose(context, ref_ctx, atol=2e-2, rtol=0)
    assert jnp.allclose(attn_prob, ref_prob, atol=2e-2, rtol=0)
    assert jnp.allclose(context_only, context, atol=2e-2, rtol=0)

    print("KERNEL_OK")
</pallas_src>

<mosaic_0001>
module attributes {stable_mosaic.version = 11 : i64} {
  func.func @_sdpa_kernel(%arg0: i32, %arg1: memref<1x4x8x8xf32, #tpu.memory_space<vmem>>, %arg2: memref<1x4x8x8xf32, #tpu.memory_space<vmem>>, %arg3: memref<1x4x8x8xf32, #tpu.memory_space<vmem>>, %arg4: memref<1x8x8xi8, #tpu.memory_space<vmem>>, %arg5: memref<1x4x8x8xf32, #tpu.memory_space<vmem>>, %arg6: memref<1x4x8x8xf32, #tpu.memory_space<vmem>>) attributes {dimension_semantics = [#tpu.dimension_semantics<parallel>], iteration_bounds = array<i64: 2>, scalar_prefetch = 0 : i64, scratch_operands = 0 : i64, tpu.core_type = #tpu.core_type<tc>, window_params = [{transform_indices = @transform_0, window_bounds = array<i64: 1, 4, 8, 8>}, {transform_indices = @transform_1, window_bounds = array<i64: 1, 4, 8, 8>}, {transform_indices = @transform_2, window_bounds = array<i64: 1, 4, 8, 8>}, {transform_indices = @transform_3, window_bounds = array<i64: 1, 8, 8>}, {transform_indices = @transform_4, window_bounds = array<i64: 1, 4, 8, 8>}, {transform_indices = @transform_5, window_bounds = array<i64: 1, 4, 8, 8>}]} {
    %c0 = arith.constant 0 : index
    %c0_0 = arith.constant 0 : index
    %c0_1 = arith.constant 0 : index
    %c0_2 = arith.constant 0 : index
    %0 = vector.load %arg1[%c0, %c0_0, %c0_1, %c0_2] : memref<1x4x8x8xf32, #tpu.memory_space<vmem>>, vector<1x4x8x8xf32>
    %1 = vector.shape_cast %0 : vector<1x4x8x8xf32> to vector<4x8x8xf32>
    %c0_3 = arith.constant 0 : index
    %c0_4 = arith.constant 0 : index
    %c0_5 = arith.constant 0 : index
    %c0_6 = arith.constant 0 : index
    %2 = vector.load %arg2[%c0_3, %c0_4, %c0_5, %c0_6] : memref<1x4x8x8xf32, #tpu.memory_space<vmem>>, vector<1x4x8x8xf32>
    %3 = vector.shape_cast %2 : vector<1x4x8x8xf32> to vector<4x8x8xf32>
    %c0_7 = arith.constant 0 : index
    %c0_8 = arith.constant 0 : index
    %c0_9 = arith.constant 0 : index
    %c0_10 = arith.constant 0 : index
    %4 = vector.load %arg3[%c0_7, %c0_8, %c0_9, %c0_10] : memref<1x4x8x8xf32, #tpu.memory_space<vmem>>, vector<1x4x8x8xf32>
    %5 = vector.shape_cast %4 : vector<1x4x8x8xf32> to vector<4x8x8xf32>
    %c0_11 = arith.constant 0 : index
    %c0_12 = arith.constant 0 : index
    %c0_13 = arith.constant 0 : index
    %6 = vector.load %arg4[%c0_11, %c0_12, %c0_13] : memref<1x8x8xi8, #tpu.memory_space<vmem>>, vector<1x8x8xi8>
    %7 = vector.shape_cast %6 : vector<1x8x8xi8> to vector<8x8xi8>
    %8 = arith.sitofp %7 : vector<8x8xi8> to vector<8x8xf32>
    "tpu.trace_start"() <{level = 10 : i32, message = "hqd,hkd->hqk"}> : () -> ()
    %cst = arith.constant dense<0.000000e+00> : vector<4x8x8xf32>
    %9 = tpu.matmul %1, %3, %cst {dimension_numbers = #tpu.dot_dimension_numbers<[2], [2], [1], [1], [0, 0, 0, 1, 1, 1], [0], [0]>} : vector<4x8x8xf32>, vector<4x8x8xf32>, vector<4x8x8xf32> -> vector<4x8x8xf32>
    "tpu.trace_stop"() : () -> ()
    %cst_14 = arith.constant 0.353553385 : f32
    %10 = vector.broadcast %cst_14 : f32 to vector<4x8x8xf32>
    %11 = arith.mulf %9, %10 : vector<4x8x8xf32>
    %12 = vector.shape_cast %8 : vector<8x8xf32> to vector<1x8x8xf32>
    %13 = vector.shape_cast %12 : vector<1x8x8xf32> to vector<1x8x8xf32>
    %14 = vector.broadcast %13 : vector<1x8x8xf32> to vector<4x8x8xf32>
    %cst_15 = arith.constant 0.000000e+00 : f32
    %15 = vector.broadcast %cst_15 : f32 to vector<4x8x8xf32>
    %16 = arith.cmpf one, %14, %15 : vector<4x8x8xf32>
    %cst_16 = arith.constant -1.000000e+09 : f32
    %17 = vector.broadcast %cst_16 : f32 to vector<4x8x8xf32>
    %18 = arith.select %16, %17, %11 : vector<4x8x8xi1>, vector<4x8x8xf32>
    %cst_17 = arith.constant dense<0xFF800000> : vector<4x8xf32>
    %19 = vector.multi_reduction <maximumf>, %18, %cst_17 [2] : vector<4x8x8xf32> to vector<4x8xf32>
    %20 = vector.shape_cast %19 : vector<4x8xf32> to vector<4x8x1xf32>
    %21 = vector.broadcast %20 : vector<4x8x1xf32> to vector<4x8x8xf32>
    %22 = arith.subf %18, %21 : vector<4x8x8xf32>
    %23 = math.exp %22 : vector<4x8x8xf32>
    %cst_18 = arith.constant dense<0.000000e+00> : vector<4x8xf32>
    %24 = vector.multi_reduction <add>, %23, %cst_18 [2] : vector<4x8x8xf32> to vector<4x8xf32>
    %25 = vector.shape_cast %24 : vector<4x8xf32> to vector<4x8x1xf32>
    %26 = tpu.reciprocal %25 {approx = true} : vector<4x8x1xf32> -> vector<4x8x1xf32>
    %27 = vector.broadcast %26 : vector<4x8x1xf32> to vector<4x8x8xf32>
    %28 = arith.mulf %23, %27 : vector<4x8x8xf32>
    "tpu.trace_start"() <{level = 10 : i32, message = "hqk,hkd->hqd"}> : () -> ()
    %cst_19 = arith.constant dense<0.000000e+00> : vector<4x8x8xf32>
    %29 = tpu.matmul %28, %5, %cst_19 {dimension_numbers = #tpu.dot_dimension_numbers<[2], [1], [1], [2], [0, 0, 0, 1, 1, 2], [0], [0]>} : vector<4x8x8xf32>, vector<4x8x8xf32>, vector<4x8x8xf32> -> vector<4x8x8xf32>
    "tpu.trace_stop"() : () -> ()
    %c0_20 = arith.constant 0 : index
    %c0_21 = arith.constant 0 : index
    %c0_22 = arith.constant 0 : index
    %c0_23 = arith.constant 0 : index
    %30 = vector.load %arg5[%c0_20, %c0_21, %c0_22, %c0_23] : memref<1x4x8x8xf32, #tpu.memory_space<vmem>>, vector<1x4x8x8xf32>
    %31 = vector.shape_cast %30 : vector<1x4x8x8xf32> to vector<4x8x8xf32>
    %32 = vector.shape_cast %29 : vector<4x8x8xf32> to vector<1x4x8x8xf32>
    tpu.vector_store %arg5[%c0_20, %c0_21, %c0_22, %c0_23], %32 {strides = array<i32>} : memref<1x4x8x8xf32, #tpu.memory_space<vmem>>, vector<1x4x8x8xf32>,
    %c0_24 = arith.constant 0 : index
    %c0_25 = arith.constant 0 : index
    %c0_26 = arith.constant 0 : index
    %c0_27 = arith.constant 0 : index
    %33 = vector.load %arg6[%c0_24, %c0_25, %c0_26, %c0_27] : memref<1x4x8x8xf32, #tpu.memory_space<vmem>>, vector<1x4x8x8xf32>
    %34 = vector.shape_cast %33 : vector<1x4x8x8xf32> to vector<4x8x8xf32>
    %35 = vector.shape_cast %28 : vector<4x8x8xf32> to vector<1x4x8x8xf32>
    tpu.vector_store %arg6[%c0_24, %c0_25, %c0_26, %c0_27], %35 {strides = array<i32>} : memref<1x4x8x8xf32, #tpu.memory_space<vmem>>, vector<1x4x8x8xf32>,
    return
  }
  func.func @transform_0(%arg0: i32) -> (i32, i32, i32, i32) {
    %c0_i32 = arith.constant 0 : i32
    %c0_i32_0 = arith.constant 0 : i32
    %c0_i32_1 = arith.constant 0 : i32
    %c0_i32_2 = arith.constant 0 : i32
    return %arg0, %c0_i32, %c0_i32_0, %c0_i32_1 : i32, i32, i32, i32
  }
  func.func @transform_1(%arg0: i32) -> (i32, i32, i32, i32) {
    %c0_i32 = arith.constant 0 : i32
    %c0_i32_0 = arith.constant 0 : i32
    %c0_i32_1 = arith.constant 0 : i32
    %c0_i32_2 = arith.constant 0 : i32
    return %arg0, %c0_i32, %c0_i32_0, %c0_i32_1 : i32, i32, i32, i32
  }
  func.func @transform_2(%arg0: i32) -> (i32, i32, i32, i32) {
    %c0_i32 = arith.constant 0 : i32
    %c0_i32_0 = arith.constant 0 : i32
    %c0_i32_1 = arith.constant 0 : i32
    %c0_i32_2 = arith.constant 0 : i32
    return %arg0, %c0_i32, %c0_i32_0, %c0_i32_1 : i32, i32, i32, i32
  }
  func.func @transform_3(%arg0: i32) -> (i32, i32, i32) {
    %c0_i32 = arith.constant 0 : i32
    %c0_i32_0 = arith.constant 0 : i32
    %c0_i32_1 = arith.constant 0 : i32
    return %arg0, %c0_i32, %c0_i32_0 : i32, i32, i32
  }
  func.func @transform_4(%arg0: i32) -> (i32, i32, i32, i32) {
    %c0_i32 = arith.constant 0 : i32
    %c0_i32_0 = arith.constant 0 : i32
    %c0_i32_1 = arith.constant 0 : i32
    %c0_i32_2 = arith.constant 0 : i32
    return %arg0, %c0_i32, %c0_i32_0, %c0_i32_1 : i32, i32, i32, i32
  }
  func.func @transform_5(%arg0: i32) -> (i32, i32, i32, i32) {
    %c0_i32 = arith.constant 0 : i32
    %c0_i32_0 = arith.constant 0 : i32
    %c0_i32_1 = arith.constant 0 : i32
    %c0_i32_2 = arith.constant 0 : i32
    return %arg0, %c0_i32, %c0_i32_0, %c0_i32_1 : i32, i32, i32, i32
  }
}

</mosaic_0001>

<bundles_post_ra>
// kernel: tpu_custom_call.1
= control target key start
LH: loop header
LB: loop body
LE: loop exit
PB: predicated region body
PF: predicated region fallthrough
CT: control target
= control target key end

     0   :  { %s2004_s0 = inlined_call_operand.hbm [shape: f32[2,4,8,8], index: 0, kind: input, shape index: {}]   ;;  %s2005_s1 = inlined_call_operand.hbm [shape: f32[2,4,8,8], index: 1, kind: input, shape index: {}]   ;;  %s2006_s2 = inlined_call_operand.hbm [shape: f32[2,4,8,8], index: 2, kind: input, shape index: {}]   ;;  %s2007_s3 = inlined_call_operand.vmem [shape: s8[2,8,8], index: 3, kind: input, shape index: {}]   ;;  %s2008_s4 = inlined_call_operand.hbm [shape: f32[2,4,8,8], index: 4, kind: output, shape index: {0}]   ;;  %s2009_s5 = inlined_call_operand.hbm [shape: f32[2,4,8,8], index: 5, kind: output, shape index: {1}]  }
   0x1   :  { %2017 = sst [smem:[#allocation16_spill]] %s2004_s0 }
   0x2   :  { %2018 = sst [smem:[#allocation17_spill]] %s2005_s1 }
   0x3   :  { %11 = vsyncpa [#allocation3], 0 }
   0x4   :  { %13 = vsyncpa [#allocation3 + $0x1], 0 }
   0x5   :  { %14 = vsyncpa [#allocation6], 0 }
   0x6   :  { %16 = vsyncpa [#allocation6 + $0x1], 0 }
   0x7   :  { %17 = vsyncpa [#allocation4], 0 }
   0x8   :  { %19 = vsyncpa [#allocation4 + $0x1], 0 }
   0x9   :  { %20 = vsyncpa [#allocation10], 0 }
   0xa   :  { %22 = vsyncpa [#allocation10 + $0x1], 0  ;;  %s1634_s18 = smov 0   ;;  %s1636_s19 = smov 0  }
   0xb   :  { %s1638_s20 = smov 0   ;;  %s1640_s21 = smov 0  }
   0xc LB: > { %s1655_s22 = sadd.s32 4294967295, %s1591_s21   ;;  %s1216_s23 = sadd.s32 4294967294, %s1591_s21   ;;  %s1591_s21 = sphi %s1640_s21, %s2041_s21   ;;  %s1587_s20 = sphi %s1638_s20, %s2040_s20   ;;  %s1583_s19 = sphi %s1636_s19, %s2039_s19   ;;  %s1579_s18 = sphi %s1634_s18, %s2038_s18  }
   0xd   : > { %s1659_s24 = sadd.s32 1, %s1591_s21   ;;  %s35_s25 = sadd.s32 1, %s1587_s20 }
   0xe   : > { %s32_s26 = ssub.s32 %s1591_s21, %s1659_s24  ;;  %p42_p0 = scmp.ne.s32.totalorder %s1587_s20, %s1583_s19 }
   0xf   : > { %p33_p1 = scmp.eq.s32.totalorder %s32_s26, 0  ;;  %p43_p2 = scmp.eq.s32.totalorder %s1591_s21, 0 }
  0x10   : > { %p48_p3 = scmp.ne.s32.totalorder %s1583_s19, %s1579_s18  ;;  %p49_p4 = scmp.eq.s32.totalorder %s1655_s22, 0 }
  0x11   : > { %s1671_s27 = scalar_select %p33_p1, %s1587_s20, %s35_s25  }
  0x12   : > { %p44_p5 = por %p43_p2, %p42_p0  ;;  %p1673_p6 = por %p49_p4, %p48_p3 }
  0x13   : > { %2019 = sst [smem:[#allocation15_spill]] %s1671_s27  ;;  %p150_p7 = scmp.eq.s32.totalorder %s1655_s22, 1 }
  0x14   : > { %s2020_s28 = scalar_select %p1673_p6, 1, 0 }
  0x15   : > { %p156_p8 = scmp.eq.s32.totalorder %s1216_s23, 1  ;;  %p1343_p10 = scmp.lt.s32.totalorder %s1591_s21, 2 }
  0x16   : > { %p1680_p11 = por %p150_p7, %p42_p0  ;;  %s2012_s6 = sand.u32 1, %s1587_s20  }
  0x17   : > { %p1684_p12 = por %p156_p8, %p48_p3  ;;  %s1690_s7 = sshll.u32 %s1591_s21, 9 }
  0x18   : > { %s2021_s29 = scalar_select %p1680_p11, 1, 0 }
  0x19   : > { %s2022_s30 = scalar_select %p1684_p12, 1, 0 }
  0x1a   : > { %s1694_s8 = sshll.u32 %s2012_s6, 5  ;;  %p1696_p13 = pnand %p1343_p10, %p44_p5 }
  0x1b   : > { %s223_s10 = sand.u32 1, %s1591_s21   ;;  %s2024_s1 = sld [smem:[#allocation17_spill]] }
  0x1c   : > { %s227_s14 = scalar_lea.vmem [#allocation5], %s1694_s8  ;;  %s1711_s16 = scalar_lea.sflag [#allocation6], %s223_s10 }
  0x1d   : > { %s234_s15 = sshll.u32 %s227_s14, 4  ;;  %p1717_p2 = pneg %p1696_p13  ;;  %s1708_s15 = int_to_ptr.vmem [resolvable:$true] %s234_s15 }
  0x21   : > { %s1705_s13 = scalar_lea.hbm %s2024_s1, %s1690_s7  ;;  %s1404_s11 = scalar_lea.hbm %s2024_s1, 1024 }
  0x22   : > { %s1399_s17 = scalar_lea.hbm %s1705_s13, 512  ;;  %p1405_p5 = scmp.lt.u32.totalorder %s1705_s13, %s2024_s1 }
  0x23   : > { %p1400_p1 = scmp.ne.s32.totalorder %s1705_s13, %s1399_s17  ;;  %p1406_p7 = scmp.lt.u32.totalorder %s1404_s11, %s1399_s17 }
  0x24   : > { %p1408_p10 = scmp.lt.u32.totalorder %s1399_s17, %s1705_s13 }
  0x25   : > { %p1402_p3 = pnand %p1717_p2, %p1400_p1  ;;  %p1407_p8 = por %p1406_p7, %p1405_p5 }
  0x27   : > { %p1403_p4 = pneg %p1402_p3  ;;  %p1409_p9 = por %p1408_p10, %p1407_p8 }
  0x29   : > { %p1410_p0 = pnand %p1409_p9, %p1403_p4 }
  0x2b   : > { %1413 = shalt.err (!%p1410_p0)
}
  0x2c   : > { %s1414_s10 = scalar_lea.vmem %s1708_s15, 512  ;;  %s1593_s25 = smov [#allocation5]  }
  0x2d   : > { %p1415_p1 = scmp.ne.s32.totalorder %s1708_s15, %s1414_s10  ;;  %s1419_s26 = sshll.u32 %s1593_s25, 4  ;;  %s1420_s26 = int_to_ptr.vmem [resolvable:$false] %s1419_s26 }
  0x2e   : > { %s1421_s12 = scalar_lea.vmem %s1420_s26, 1024  ;;  %p1422_p11 = scmp.lt.s32.totalorder %s1708_s15, %s1420_s26 }
  0x2f   : > { %p1417_p3 = pnand %p1415_p1, %p1717_p2  ;;  %p1423_p6 = scmp.lt.s32.totalorder %s1421_s12, %s1414_s10 }
  0x31   : > { %p1418_p12 = pneg %p1417_p3  ;;  %p1424_p5 = por %p1423_p6, %p1422_p11 }
  0x33   : > { %p1425_p7 = pnand %p1424_p5, %p1418_p12 }
  0x35   : > { %1428 = shalt.err (!%p1425_p7)
}
  0x36   : > { %s2013_s17 = smov 128   ;;  %s2015_s11 = smov 8  }
  0x37   : > { %1332 = dma.hbm_to_vmem [thread:$0]  (!%p1696_p13), %s1705_s13, 512, %s1708_s15, %s1711_s16, %s2013_s17, %s2013_s17, %s2015_s11  }
  0x38   : > { %p270_p6 = scmp.lt.s32.totalorder %s1591_s21, 3  ;;  %s2026_s0 = sld [smem:[#allocation16_spill]] }
  0x39   : > { %p2027_p9 = scmp.ge.s32.totalorder %s1591_s21, 1  ;;  %s206_s12 = scalar_lea.vmem [#allocation2], %s1694_s8 }
  0x3a   : > { %s213_s6 = sshll.u32 %s206_s12, 4  ;;  %s2029_s13 = sand.u32 1, %s1587_s20   ;;  %s1758_s6 = int_to_ptr.vmem [resolvable:$true] %s213_s6 }
  0x3b   : > { %p1753_p11 = pnand %p2027_p9, %p270_p6  ;;  %s1762_s15 = scalar_lea.sflag [#allocation3], %s2029_s13 }
  0x3d   : > { %s2028_s26 = scalar_select %p1753_p11, 1, 0 }
  0x3e   : > { %s1749_s25 = scalar_lea.hbm %s2026_s0, %s1690_s7  ;;  %s1434_s11 = scalar_lea.hbm %s2026_s0, 1024 }
  0x3f   : > { %s1429_s17 = scalar_lea.hbm %s1749_s25, 512  ;;  %p1435_p8 = scmp.lt.u32.totalorder %s1749_s25, %s2026_s0 }
  0x40   : > { %p1430_p12 = scmp.ne.s32.totalorder %s1749_s25, %s1429_s17  ;;  %p1436_p10 = scmp.lt.u32.totalorder %s1434_s11, %s1429_s17 }
  0x41   : > { %p1438_p3 = scmp.lt.u32.totalorder %s1429_s17, %s1749_s25 }
  0x42   : > { %p1432_p0 = pnand %p1430_p12, %p1717_p2  ;;  %p1437_p1 = por %p1436_p10, %p1435_p8 }
  0x44   : > { %p1433_p4 = pneg %p1432_p0  ;;  %p1439_p5 = por %p1438_p3, %p1437_p1 }
  0x46   : > { %p1440_p7 = pnand %p1439_p5, %p1433_p4 }
  0x48   : > { %1443 = shalt.err (!%p1440_p7)
}
  0x49   : > { %s1444_s12 = scalar_lea.vmem %s1758_s6, 512  ;;  %s1596_s13 = smov [#allocation2]  }
  0x4a   : > { %p1445_p6 = scmp.ne.s32.totalorder %s1758_s6, %s1444_s12  ;;  %s1449_s14 = sshll.u32 %s1596_s13, 4  ;;  %s1450_s14 = int_to_ptr.vmem [resolvable:$false] %s1449_s14 }
  0x4b   : > { %s1451_s1 = scalar_lea.vmem %s1450_s14, 1024  ;;  %p1452_p0 = scmp.lt.s32.totalorder %s1758_s6, %s1450_s14 }
  0x4c   : > { %p1447_p9 = pnand %p1445_p6, %p1717_p2  ;;  %p1453_p11 = scmp.lt.s32.totalorder %s1451_s1, %s1444_s12 }
  0x4e   : > { %p1448_p12 = pneg %p1447_p9  ;;  %p1454_p8 = por %p1453_p11, %p1452_p0 }
  0x50   : > { %p1455_p10 = pnand %p1454_p8, %p1448_p12 }
  0x52   : > { %1458 = shalt.err (!%p1455_p10)
}
  0x53   : > { %s2030_s27 = smov 8   ;;  %s2031_s17 = smov 128  }
  0x54   : > { %1329 = dma.hbm_to_vmem [thread:$0]  (!%p1696_p13), %s1749_s25, 512, %s1758_s6, %s1762_s15, %s2031_s17, %s2031_s17, %s2030_s27  }
  0x55   : > { %s1793_s13 = scalar_lea.hbm %s2006_s2, %s1690_s7  ;;  %s248_s12 = scalar_lea.vmem [#allocation7], %s1694_s8 }
  0x56   : > { %s255_s14 = sshll.u32 %s248_s12, 4  ;;  %s1459_s1 = scalar_lea.hbm %s1793_s13, 512  ;;  %s1796_s14 = int_to_ptr.vmem [resolvable:$true] %s255_s14 }
  0x57   : > { %p1460_p11 = scmp.ne.s32.totalorder %s1793_s13, %s1459_s1  ;;  %s1464_s25 = scalar_lea.hbm %s2006_s2, 1024 }
  0x58   : > { %p1465_p3 = scmp.lt.u32.totalorder %s1793_s13, %s2006_s2  ;;  %p1466_p5 = scmp.lt.u32.totalorder %s1464_s25, %s1459_s1 }
  0x59   : > { %p1462_p4 = pnand %p1460_p11, %p1717_p2  ;;  %p1468_p6 = scmp.lt.u32.totalorder %s1459_s1, %s1793_s13 }
  0x5a   : > { %p1467_p7 = por %p1466_p5, %p1465_p3 }
  0x5b   : > { %p1463_p1 = pneg %p1462_p4 }
  0x5c   : > { %p1469_p9 = por %p1468_p6, %p1467_p7 }
  0x5e   : > { %p1470_p12 = pnand %p1469_p9, %p1463_p1 }
  0x60   : > { %1473 = shalt.err (!%p1470_p12)
}
  0x61   : > { %s1474_s8 = scalar_lea.vmem %s1796_s14, 512  ;;  %s1597_s0 = smov [#allocation7]  }
  0x62   : > { %p1475_p0 = scmp.ne.s32.totalorder %s1796_s14, %s1474_s8  ;;  %s1479_s11 = sshll.u32 %s1597_s0, 4  ;;  %s1480_s11 = int_to_ptr.vmem [resolvable:$false] %s1479_s11 }
  0x63   : > { %s1481_s10 = scalar_lea.vmem %s1480_s11, 1024  ;;  %p1482_p11 = scmp.lt.s32.totalorder %s1796_s14, %s1480_s11 }
  0x64   : > { %p1477_p8 = pnand %p1475_p0, %p1717_p2  ;;  %p1483_p4 = scmp.lt.s32.totalorder %s1481_s10, %s1474_s8 }
  0x66   : > { %p1478_p10 = pneg %p1477_p8  ;;  %p1484_p3 = por %p1483_p4, %p1482_p11 }
  0x68   : > { %p1485_p5 = pnand %p1484_p3, %p1478_p10 }
  0x6a   : > { %1488 = shalt.err (!%p1485_p5)
}
  0x6b   : > { %1335 = dma.hbm_to_vmem [thread:$0]  (!%p1696_p13), %s1793_s13, 512, %s1796_s14, %s1711_s16, %s2031_s17, %s2031_s17, %s2030_s27  }
  0x6c   : > { %p2032_p2 = scmp.ne.s32.totalorder %s2028_s26, 0 }
  0x6d   : > { %s1826_s23 = sand.u32 (!%p2032_p2), 1, %s1583_s19   ;;  %p2033_p1 = scmp.ne.s32.totalorder (!%p2032_p2), %s2020_s28, 0 }
  0x6e   : > { %274 = sbr.rel (%p2032_p2) target bundleno = 890 (0x37a), region = 36  ;;  %s1829_s12 = sshll.u32 (!%p2032_p2), %s1826_s23, 5 }
  0x6f   : > { %s277_s9 = scalar_lea.sflag (!%p2032_p2), [#allocation3], %s1826_s23  ;;  %s1833_s1 = scalar_lea.vmem (!%p2032_p2), [#allocation2], %s1829_s12 }
  0x75   : > { %1562 = dma.done.wait (%p2033_p1), %s277_s9, 512  }
  0x76   : > { %1564 = vsyncadd (%p2033_p1), %s277_s9, 4294966784  ;;  %s285_s16 = sand.u32 1, %s1655_s22   ;;  %s289_s27 = scalar_lea.vmem [#allocation5], %s1829_s12 }
  0x77   : > { %s286_s26 = scalar_lea.sflag [#allocation6], %s285_s16 }
  0x78   : > { %1566 = dma.done.wait (%p2033_p1), %s286_s26, 1024  }
  0x79   : > { %1568 = vsyncadd (%p2033_p1), %s286_s26, 4294966272  ;;  %v1598_v0 = vmov 0.0   ;;  %vm1599_vm0 = vmmov 0   ;;  %vm363_vm1 = vcmask 64512   ;;  %v352_v1 = vld [vmem:[%s289_s27] sm:$0xff]  ;;  %v353_v2 = vld [vmem:[%s289_s27 + $0x8] sm:$0xff] }
  0x7a   : > { %1276 = vmatprep.subr.mxu0 %v1598_v0  ;;  %1278 = vmatprep.mubr.msk.f32.mxu0 %vm1599_vm0, %v1598_v0  ;;  %v348_v3 = vld [vmem:[%s1833_s1] sm:$0xff]  ;;  %v349_v4 = vld [vmem:[%s1833_s1 + $0x8] sm:$0xff]  ;;  %v354_v5 = vld [vmem:[%s289_s27 + $0x10] sm:$0xff]  ;;  %p344_p13 = scmp.lt.s32.totalorder %s1655_s22, 1  ;;  %s298_s25 = scalar_lea.vmem [#allocation7], %s1829_s12 }
  0x7b   : > { %1281 = vmatprep.subr.mxu1 %v1598_v0  ;;  %1283 = vmatprep.mubr.msk.f32.mxu1 %vm1599_vm0, %v1598_v0  ;;  %v355_v6 = vld [vmem:[%s289_s27 + $0x18] sm:$0xff]  ;;  %v350_v7 = vld [vmem:[%s1833_s1 + $0x10] sm:$0xff]  ;;  %v356_v52 = vld [vmem:[%s298_s25] sm:$0xff]  ;;  %s343_s15 = scalar_lea.vmem [#allocation9], %s1829_s12  ;;  %s1258_s7 = sshll.u32 %s1655_s22, 9 }
  0x7c   : > { %1277 = vmatpush3.xpose.msk.msra.mxu0 %vm363_vm1, %v352_v1  ;;  %1282 = vmatpush3.xpose.msk.msra.mxu1 %vm363_vm1, %v353_v2  ;;  %v351_v8 = vld [vmem:[%s1833_s1 + $0x18] sm:$0xff]  ;;  %s345_s28 = scalar_select %p344_p13, %s1655_s22, 1  ;;  %v357_v53 = vld [vmem:[%s298_s25 + $0x8] sm:$0xff]  ;;  %v358_v60 = vld [vmem:[%s298_s25 + $0x10] sm:$0xff] }
  0x7d   : > { %1286 = vmatprep.subr.mxu0 %v1598_v0  ;;  %1291 = vmatprep.subr.mxu1 %v1598_v0  ;;  %v359_v1 = vld [vmem:[%s298_s25 + $0x18] sm:$0xff]  ;;  %s1914_s11 = scalar_lea.hbm %s2009_s5, %s1258_s7  ;;  %s1056_s10 = sshll.u32 %s343_s15, 4  ;;  %s1916_s10 = int_to_ptr.vmem [resolvable:$true] %s1056_s10 }
  0x7e   : > { %s1234_s17 = sshll.u32 %s345_s28, 1  ;;  %s1027_s9 = scalar_lea.sflag [#allocation10], %s1826_s23 }
  0x7f   : > { %1279 = vmatmul.mubr.msk.f32.vlgmr.msra.gmra.mrb[0].mxu0 %vm363_vm1, %v348_v3  ;;  %1284 = vmatmul.mubr.msk.f32.vlgmr.msra.gmra.mrb[0].mxu1 %vm363_vm1, %v349_v4  ;;  %s347_s6 = scalar_lea.vmem %s2007_s3, %s1234_s17  ;;  %s1489_s1 = scalar_lea.vmem %s1916_s10, 512 }
  0x80   : > { %1287 = vmatpush3.xpose.msk.msra.mxu0 %vm363_vm1, %v354_v5  ;;  %1288 = vmatprep.mubr.msk.f32.mxu0 %vm1599_vm0, %v1598_v0  ;;  %v360_v9 = vld [vmem:[%s347_s6] sm:$0x3]  ;;  %p1490_p7 = scmp.ne.s32.totalorder %s1916_s10, %s1489_s1  ;;  %p2034_p6 = scmp.ne.s32.totalorder %s2021_s29, 0 }
  0x81   : > { %1292 = vmatpush3.xpose.msk.msra.mxu1 %vm363_vm1, %v355_v6  ;;  %1293 = vmatprep.mubr.msk.f32.mxu1 %vm1599_vm0, %v1598_v0  ;;  %v361_v10 = vunpack.c.0.s8 %v360_v9  ;;  %s1600_s16 = smov [#allocation9]  }
  0x82   : > { %1296 = vmatprep.subr.mxu0 %v1598_v0  ;;  %1301 = vmatprep.subr.mxu1 %v1598_v0  ;;  %p1491_p9 = pnand %p1490_p7, %p2034_p6  ;;  %s1493_s26 = sshll.u32 %s1600_s16, 4  ;;  %s1494_s26 = int_to_ptr.vmem [resolvable:$false] %s1493_s26 }
  0x83   : > { %1289 = vmatmul.mubr.msk.f32.vlgmr.msra.gmra.mrb[2].mxu0 %vm363_vm1, %v350_v7  ;;  %v362_v11 = vcvt.s32.f32 %v361_v10  ;;  %s1495_s27 = scalar_lea.vmem %s1494_s26, 1024  ;;  %p1496_p0 = scmp.lt.s32.totalorder %s1916_s10, %s1494_s26 }
  0x84   : > { %1294 = vmatmul.mubr.msk.f32.vlgmr.msra.gmra.mrb[2].mxu1 %vm363_vm1, %v351_v8  ;;  %1298 = vmatprep.mubr.msk.f32.mxu0 %vm1599_vm0, %v1598_v0  ;;  %p1492_p12 = pneg %p1491_p9  ;;  %p1497_p8 = scmp.lt.s32.totalorder %s1495_s27, %s1489_s1 }
  0x85   : > { %1303 = vmatprep.mubr.msk.f32.mxu1 %vm1599_vm0, %v1598_v0  ;;  %vm672_vm2 = vcmp.ne.f32.partialorder %v362_v11, 0.0  ;;  %1297 = vmatpush3.msra.mxu0 %v356_v52 }
  0x86   : > { %1306 = vmatprep.subr.mxu0 %v1598_v0  ;;  %1302 = vmatpush3.msra.mxu1 %v357_v53  ;;  %p1498_p10 = por %p1497_p8, %p1496_p0 }
  0x87   : > { %1311 = vmatprep.subr.mxu1 %v1598_v0 }
  0x88   : > { %p1499_p11 = pnand %p1498_p10, %p1492_p12 }
 0x152   : > { %v436_v12 = vpop.f32.mrb[0].mxu0  ;;  %v512_v13 = vpop.f32.mrb[0].mxu1 }
 0x153   : > { %v668_v14 = vmul.f32 0.35355338, %v436_v12  ;;  %v1280_v15 = vpop.f32.mrb[1].mxu0  ;;  %v669_v16 = vmul.f32 0.35355338, %v512_v13  ;;  %v1285_v17 = vpop.f32.mrb[1].mxu1 }
 0x155   : > { %v673_v18 = vsel %vm672_vm2, -1e+09, %v668_v14  ;;  %v674_v19 = vsel %vm672_vm2, -1e+09, %v669_v16 }
 0x156   : > { %v588_v20 = vpop.f32.mrb[2].mxu0  ;;  %v677_v21 = vsel %vm363_vm1, %v673_v18, -inf  ;;  %v680_v27 = vsel %vm363_vm1, %v674_v19, -inf }
 0x157   : > { %v670_v22 = vmul.f32 0.35355338, %v588_v20  ;;  %678 = vmax.xlane.f32.xlu0 %v677_v21  ;;  %v1290_v23 = vpop.f32.mrb[3].mxu0  ;;  %v664_v24 = vpop.f32.mrb[2].mxu1 }
 0x158   : > { %v671_v25 = vmul.f32 0.35355338, %v664_v24  ;;  %v1295_v26 = vpop.f32.mrb[3].mxu1 }
 0x159   : > { %v675_v28 = vsel %vm672_vm2, -1e+09, %v670_v22 }
 0x15a   : > { %v683_v29 = vsel %vm363_vm1, %v675_v28, -inf  ;;  %v676_v30 = vsel %vm672_vm2, -1e+09, %v671_v25 }
 0x15b   : > { %681 = vmax.xlane.f32.xlu0 %v680_v27  ;;  %684 = vmax.xlane.f32.xlu1 %v683_v29  ;;  %v686_v31 = vsel %vm363_vm1, %v676_v30, -inf }
 0x15f   : > { %687 = vmax.xlane.f32.xlu1 %v686_v31 }
 0x1e4   : > { %v679_v32 = vpop.xlane.xlu0 %678 }
 0x1e5   : > { %v689_v33 = vsub.f32 %v673_v18, %v679_v32 }
 0x1e7   : > { %v693_v34 = vmul.f32 1.442695, %v689_v33 }
 0x1e8   : > { %v682_v35 = vpop.xlane.xlu0 %681  ;;  %v685_v36 = vpop.xlane.xlu1 %684 }
 0x1e9   : > { %1383 = vpow2.f32 %v693_v34  ;;  %v690_v37 = vsub.f32 %v674_v19, %v682_v35  ;;  %v691_v38 = vsub.f32 %v675_v28, %v685_v36 }
 0x1eb   : > { %v695_v39 = vmul.f32 1.442695, %v690_v37  ;;  %v697_v40 = vmul.f32 1.442695, %v691_v38 }
 0x1ec   : > { %v688_v41 = vpop.xlane.xlu1 %687 }
 0x1ed   : > { %1385 = vpow2.f32 %v695_v39  ;;  %v692_v42 = vsub.f32 %v676_v30, %v688_v41 }
 0x1ee   : > { %1387 = vpow2.f32 %v697_v40 }
 0x1ef   : > { %v699_v43 = vmul.f32 1.442695, %v692_v42 }
 0x1f1   : > { %1389 = vpow2.f32 %v699_v43 }
 0x1f3   : > { %v1384_v44 = vpop.eup %1383 }
 0x1f4   : > { %v701_v45 = vsel %vm363_vm1, %v1384_v44, 0.0 }
 0x1f5   : > { %702 = vadd.xlane.f32.xlu0 %v701_v45 }
 0x1f7   : > { %v1386_v46 = vpop.eup %1385 }
 0x1f8   : > { %v1388_v47 = vpop.eup %1387  ;;  %v704_v48 = vsel %vm363_vm1, %v1386_v46, 0.0 }
 0x1f9   : > { %705 = vadd.xlane.f32.xlu1 %v704_v48  ;;  %v707_v49 = vsel %vm363_vm1, %v1388_v47, 0.0 }
 0x1fa   : > { %708 = vadd.xlane.f32.xlu0 %v707_v49 }
 0x1fb   : > { %v1390_v50 = vpop.eup %1389 }
 0x1fc   : > { %v710_v51 = vsel %vm363_vm1, %v1390_v50, 0.0 }
 0x1fd   : > { %711 = vadd.xlane.f32.xlu1 %v710_v51 }
 0x282   : > { %v703_v54 = vpop.xlane.xlu0 %702 }
 0x283   : > { %1391 = vrcp.f32 %v703_v54 }
 0x286   : > { %v706_v55 = vpop.xlane.xlu1 %705 }
 0x287   : > { %v709_v56 = vpop.xlane.xlu0 %708  ;;  %1393 = vrcp.f32 %v706_v55 }
 0x288   : > { %1395 = vrcp.f32 %v709_v56 }
 0x28a   : > { %v712_v57 = vpop.xlane.xlu1 %711 }
 0x28b   : > { %1397 = vrcp.f32 %v712_v57 }
 0x28d   : > { %v1392_v58 = vpop.eup %1391 }
 0x28e   : > { %v717_v59 = vmul.f32 %v1392_v58, %v1384_v44 }
 0x290   : > { %1017 = vst.msk [vmem:[%s343_s15] sm:$0xff] %vm363_vm1, %v717_v59  ;;  %1299 = vmatmul.mubr.msk.f32.vlgmr.msra.gmra.mrb[4].mxu0 %vm363_vm1, %v717_v59 }
 0x291   : > { %v1394_v61 = vpop.eup %1393  ;;  %1307 = vmatpush3.msra.mxu0 %v358_v60  ;;  %1308 = vmatprep.mubr.msk.f32.mxu0 %vm1599_vm0, %v1598_v0 }
 0x292   : > { %v1396_v62 = vpop.eup %1395  ;;  %v718_v63 = vmul.f32 %v1394_v61, %v1386_v46 }
 0x293   : > { %v719_v2 = vmul.f32 %v1396_v62, %v1388_v47 }
 0x294   : > { %1018 = vst.msk [vmem:[%s343_s15 + $0x8] sm:$0xff] %vm363_vm1, %v718_v63  ;;  %1304 = vmatmul.mubr.msk.f32.vlgmr.msra.gmra.mrb[4].mxu1 %vm363_vm1, %v718_v63 }
 0x295   : > { %v1398_v3 = vpop.eup %1397  ;;  %1019 = vst.msk [vmem:[%s343_s15 + $0x10] sm:$0xff] %vm363_vm1, %v719_v2  ;;  %1309 = vmatmul.mubr.msk.f32.vlgmr.msra.gmra.mrb[6].mxu0 %vm363_vm1, %v719_v2  ;;  %1312 = vmatpush3.msra.mxu1 %v359_v1 }
 0x296   : > { %v720_v4 = vmul.f32 %v1398_v3, %v1390_v50  ;;  %1313 = vmatprep.mubr.msk.f32.mxu1 %vm1599_vm0, %v1598_v0 }
 0x298   : > { %1020 = vst.msk [vmem:[%s343_s15 + $0x18] sm:$0xff] %vm363_vm1, %v720_v4  ;;  %1314 = vmatmul.mubr.msk.f32.vlgmr.msra.gmra.mrb[6].mxu1 %vm363_vm1, %v720_v4 }
 0x299   : > { %1502 = shalt.err (!%p1499_p11)
}
 0x29a   : > { %s1503_s28 = scalar_lea.hbm %s1914_s11, 512  ;;  %s1507_s14 = scalar_lea.hbm %s2009_s5, 1024 }
 0x29b   : > { %p1504_p4 = scmp.ne.s32.totalorder %s1914_s11, %s1503_s28  ;;  %p1508_p2 = scmp.lt.u32.totalorder %s1914_s11, %s2009_s5 }
 0x29c   : > { %p1509_p1 = scmp.lt.u32.totalorder %s1507_s14, %s1503_s28  ;;  %p1511_p7 = scmp.lt.u32.totalorder %s1503_s28, %s1914_s11 }
 0x29d   : > { %p1505_p3 = pnand %p1504_p4, %p2034_p6 }
 0x29e   : > { %p1510_p13 = por %p1509_p1, %p1508_p2 }
 0x29f   : > { %p1506_p5 = pneg %p1505_p3 }
 0x2a0   : > { %p1512_p9 = por %p1511_p7, %p1510_p13 }
 0x2a2   : > { %p1513_p12 = pnand %p1512_p9, %p1506_p5 }
 0x2a4   : > { %1516 = shalt.err (!%p1513_p12)
}
 0x2a5   : > { %s1601_s15 = smov 128   ;;  %s1602_s8 = smov 8  }
 0x2a6   : > { %1323 = dma.vmem_to_hbm [thread:$0]  (%p2034_p6), %s1916_s10, 512, %s1914_s11, %s1027_s9, %s1601_s15, %s1601_s15, %s1602_s8  }
 0x2a7   : > { %s336_s0 = scalar_lea.vmem [#allocation8], %s1829_s12  ;;  %s1956_s10 = scalar_lea.hbm %s2008_s4, %s1258_s7 }
 0x2a8   : > { %s1040_s1 = sshll.u32 %s336_s0, 4  ;;  %s1022_s9 = scalar_lea.sflag [#allocation4], %s1826_s23  ;;  %s1948_s1 = int_to_ptr.vmem [resolvable:$true] %s1040_s1 }
 0x2a9   : > { %s1517_s16 = scalar_lea.vmem %s1948_s1, 512  ;;  %s1603_s26 = smov [#allocation8]  }
 0x2aa   : > { %p1518_p0 = scmp.ne.s32.totalorder %s1948_s1, %s1517_s16  ;;  %s1521_s27 = sshll.u32 %s1603_s26, 4  ;;  %s1522_s27 = int_to_ptr.vmem [resolvable:$false] %s1521_s27 }
 0x2ab   : > { %s1523_s28 = scalar_lea.vmem %s1522_s27, 1024  ;;  %p1524_p11 = scmp.lt.s32.totalorder %s1948_s1, %s1522_s27 }
 0x2ac   : > { %p1519_p8 = pnand %p1518_p0, %p2034_p6  ;;  %p1525_p4 = scmp.lt.s32.totalorder %s1523_s28, %s1517_s16 }
 0x2ae   : > { %p1520_p10 = pneg %p1519_p8  ;;  %p1526_p3 = por %p1525_p4, %p1524_p11 }
 0x2b0   : > { %p1527_p5 = pnand %p1526_p3, %p1520_p10 }
 0x363   : > { %v790_v0 = vpop.f32.mrb[4].mxu0 }
 0x364   : > { %1013 = vst.msk [vmem:[%s336_s0] sm:$0xff] %vm363_vm1, %v790_v0  ;;  %v1300_v5 = vpop.f32.mrb[5].mxu0 }
 0x367   : > { %v863_v6 = vpop.f32.mrb[4].mxu1 }
 0x368   : > { %1014 = vst.msk [vmem:[%s336_s0 + $0x8] sm:$0xff] %vm363_vm1, %v863_v6  ;;  %v936_v7 = vpop.f32.mrb[6].mxu0  ;;  %v1305_v8 = vpop.f32.mrb[5].mxu1 }
 0x369   : > { %1015 = vst.msk [vmem:[%s336_s0 + $0x10] sm:$0xff] %vm363_vm1, %v936_v7  ;;  %v1310_v9 = vpop.f32.mrb[7].mxu0 }
 0x36b   : > { %v1009_v10 = vpop.f32.mrb[6].mxu1 }
 0x36c   : > { %1016 = vst.msk [vmem:[%s336_s0 + $0x18] sm:$0xff] %vm363_vm1, %v1009_v10  ;;  %v1315_v11 = vpop.f32.mrb[7].mxu1 }
 0x36d   : > { %1530 = shalt.err (!%p1527_p5)
}
 0x36e   : > { %s1531_s22 = scalar_lea.hbm %s1956_s10, 512  ;;  %s1535_s13 = scalar_lea.hbm %s2008_s4, 1024 }
 0x36f   : > { %p1532_p2 = scmp.ne.s32.totalorder %s1956_s10, %s1531_s22  ;;  %p1536_p7 = scmp.lt.u32.totalorder %s1956_s10, %s2008_s4 }
 0x370   : > { %p1537_p9 = scmp.lt.u32.totalorder %s1535_s13, %s1531_s22  ;;  %p1539_p0 = scmp.lt.u32.totalorder %s1531_s22, %s1956_s10 }
 0x371   : > { %p1533_p1 = pnand %p1532_p2, %p2034_p6 }
 0x372   : > { %p1538_p12 = por %p1537_p9, %p1536_p7 }
 0x373   : > { %p1534_p13 = pneg %p1533_p1 }
 0x374   : > { %p1540_p8 = por %p1539_p0, %p1538_p12 }
 0x376   : > { %p1541_p10 = pnand %p1540_p8, %p1534_p13 }
 0x378   : > { %1544 = shalt.err (!%p1541_p10)
}
 0x379   : > { %1322 = dma.vmem_to_hbm [thread:$0]  (%p2034_p6), %s1948_s1, 512, %s1956_s10, %s1022_s9, %s1601_s15, %s1601_s15, %s1602_s8  }
 0x37a PF: > { %s1071_s25 = sand.u32 1, %s1579_s18   ;;  %p2035_p11 = scmp.ne.s32.totalorder %s2022_s30, 0 }
 0x37b   : > { %p2036_p4 = scmp.ge.s32.totalorder %s1591_s21, 2  ;;  %s1072_s0 = scalar_lea.sflag [#allocation4], %s1071_s25 }
 0x37d   : > { %p1337_p3 = pnand %p2036_p4, %p2035_p11 }
 0x37f   : > { %1570 = dma.done.wait (!%p1337_p3), %s1072_s0, 512  }
 0x380   : > { %1572 = vsyncadd (!%p1337_p3), %s1072_s0, 4294966784  ;;  %s1081_s29 = scalar_lea.sflag [#allocation10], %s1071_s25 }
 0x381   : > { %1574 = dma.done.wait (!%p1337_p3), %s1081_s29, 512  }
 0x382   : > { %1576 = vsyncadd (!%p1337_p3), %s1081_s29, 4294966784  ;;  %s2037_s23 = sld [smem:[#allocation15_spill]]  ;;  %p25_p6 = scmp.ge.s32.totalorder %s1659_s24, 4  }
 0x383   : > { %s2038_s18 = smov %s1583_s19  ;;  %s2039_s19 = smov %s1587_s20 }
 0x384   : > { %s2041_s21 = smov %s1659_s24  ;;  %27 = sbr.rel (!%p25_p6) target bundleno = 12 (0xc), region = 125 }
 0x388   : > { %s2040_s20 = smov %s2037_s23 }
 0x38b   :  { %1086 = vsyncpa [#allocation3], 1 }
 0x38c   :  { %1088 = vsyncpa [#allocation3 + $0x1], 1 }
 0x38d   :  { %1089 = vsyncpa [#allocation6], 1 }
 0x38e   :  { %1091 = vsyncpa [#allocation6 + $0x1], 1 }
 0x38f   :  { %1092 = vsyncpa [#allocation4], 1 }
 0x390   :  { %1094 = vsyncpa [#allocation4 + $0x1], 1 }
 0x391   :  { %1095 = vsyncpa [#allocation10], 1 }
 0x392   :  { %1097 = vsyncpa [#allocation10 + $0x1], 1 }

</bundles_post_ra>
